<compile_context>
chip_gen: v6e
topology: v6e:2x2x1
jax: 0.10.0
libtpu: 0.0.40
codegen_flags: <defaults>
</compile_context>

<pallas_src>
import functools

import jax
import jax.numpy as jnp
from jax import lax
from jax.experimental import pallas as pl
from jax.experimental.pallas import tpu as pltpu


# ----------------------------------------------------------------------------
# Fused kernel: [conv3x3+BN](stu+tea, one matmul) -> per-image attention.
# One grid step handles `Bt` batch elements.
# ----------------------------------------------------------------------------
def tat_fused_kernel(patches_ref, w_ref, scale_ref, shift_ref, out_ref,
                     *, N, Bt, mm_dtype, approx_recip):
    # patches_ref : (1, 2*Bt*N, 9*Cin) mm_dtype — im2col patches, rows ordered
    #               [stu img 0..Bt-1 (N rows each), tea img 0..Bt-1].
    # w_ref       : (9*Cin, Cout)      mm_dtype — im2col-ordered conv weight.
    # scale/shift : (1, Cout)          f32 — folded eval-mode BatchNorm affine.
    # out_ref     : (Bt, N, Cout)      f32 — token-major s_target.
    Cout = w_ref.shape[-1]

    # --- conv3x3 + BN for student AND teacher in one MXU pass (M = 2*Bt*N) ---
    y = jnp.dot(patches_ref[0], w_ref[...],
                preferred_element_type=jnp.float32)            # (2*Bt*N, Cout)
    y = y * scale_ref[...] + shift_ref[...]                    # BN affine (f32)
    y_mm = y.astype(mm_dtype)                                  # single recast
    ys_mm = y_mm[:Bt * N, :]   # student, token-major == f_s^T == f_self^T
    yt_mm = y_mm[Bt * N:, :]   # teacher, token-major == f_t^T

    # --- per-image attention; results gathered into ONE final store ---
    outs = []
    for bb in range(Bt):
        ys = ys_mm[bb * N:(bb + 1) * N, :]                     # (N, C)
        yt = yt_mm[bb * N:(bb + 1) * N, :]                     # (N, C)

        # sxt[i, j] = <f_s[i, :], f_t[:, j]>  (contract the channel dim)
        sxt = lax.dot_general(ys, yt, (((1,), (1,)), ((), ())),
                              preferred_element_type=jnp.float32)  # (N, N) f32

        # torch softmax over dim=1 of (B, N, N) -> axis 0 of this (N, N) tile.
        # All softmax math in f32 (no bf16 VPU/EUP on v5e).
        m = jnp.max(sxt, axis=0, keepdims=True)                # (1, N)
        e = jnp.exp(sxt - m)
        colsum = jnp.sum(e, axis=0, keepdims=True)             # (1, N)
        inv = pl.reciprocal(colsum, approx=approx_recip)       # EUP slot
        # Per-column normalization folded in as a lane-broadcast scale of e.
        # TODO(synk): for large N, transpose inv to (N,1) on the XLU and scale
        # ys rows (N*C multiplies) instead of these N^2 multiplies.
        w_n = (e * inv).astype(mm_dtype)

        # s_target[i, :] = sum_j w[i, j] * f_self[j, :]  ==  w @ ys
        outs.append(jnp.dot(w_n, ys, preferred_element_type=jnp.float32))

    out_flat = outs[0] if Bt == 1 else jnp.concatenate(outs, axis=0)  # (Bt*N, C)
    out_ref[...] = out_flat.reshape(Bt, N, Cout).astype(out_ref.dtype)


# ----------------------------------------------------------------------------
# Wrapper: XLA-side im2col / layout plumbing, single fused pallas_call.
# ----------------------------------------------------------------------------
def _im2col_patches(x_nchw, H, W):
    """(..., Cin, H, W) -> (..., H*W, 9*Cin); column order (ky*3+kx)*Cin + ci,
    matching w_conv transposed to (ky, kx, ci, co)."""
    Cin = x_nchw.shape[-3]
    xh = jnp.moveaxis(x_nchw, -3, -1)                          # (..., H, W, Cin)
    pad = [(0, 0)] * (xh.ndim - 3) + [(1, 1), (1, 1), (0, 0)]
    xp = jnp.pad(xh, pad)
    cols = [xp[..., dy:dy + H, dx:dx + W, :]
            for dy in range(3) for dx in range(3)]
    pat = jnp.concatenate(cols, axis=-1)                       # (..., H, W, 9*Cin)
    return pat.reshape(pat.shape[:-3] + (H * W, 9 * Cin))


@functools.partial(jax.jit, static_argnames=("block_b", "mm_dtype"))
def transformation_forward(feat_stu, feat_tea, w_conv, bn_scale, bn_shift,
                           *, block_b=None, mm_dtype=jnp.bfloat16):
    B, Cin, H, W = feat_stu.shape
    Cout = w_conv.shape[0]
    N = H * W
    K = 9 * Cin

    if block_b is None:
        # Aim for M = 2*block_b*N >= 256 per conv matmul (v6e/v7x MXU sweet
        # spot; >=128 is enough on v5e), keeping block_b a divisor of B.
        # On v7x you may prefer to halve this to keep the grid an even
        # length >= 2 for megacore sharding — measure.
        target = max(1, -(-256 // (2 * N)))
        block_b = max(d for d in range(1, B + 1) if B % d == 0 and d <= target)
    assert B % block_b == 0, (B, block_b)
    G = B // block_b
    M = 2 * block_b * N

    # --- XLA-side layout plumbing (no in-kernel relayouts) ------------------
    # im2col patches for student+teacher built in one shot and regrouped so a
    # single grid step sees [stu_0..stu_{bb-1}, tea_0..tea_{bb-1}] as M rows.
    x_all = jnp.stack([feat_stu, feat_tea], axis=0)            # (2, B, Cin, H, W)
    patches = _im2col_patches(x_all, H, W)                     # (2, B, N, K)
    patches = patches.reshape(2, G, block_b * N, K)
    patches = jnp.transpose(patches, (1, 0, 2, 3)).reshape(G, M, K)
    patches = patches.astype(mm_dtype)

    # OIHW -> rows ordered as (ky*3 + kx)*Cin + ci, matching im2col columns.
    w9 = jnp.transpose(w_conv, (2, 3, 1, 0)).reshape(K, Cout).astype(mm_dtype)
    scale = bn_scale.reshape(1, Cout).astype(jnp.float32)
    shift = bn_shift.reshape(1, Cout).astype(jnp.float32)

    kernel = functools.partial(
        tat_fused_kernel, N=N, Bt=block_b, mm_dtype=mm_dtype,
        approx_recip=(mm_dtype != jnp.float32))

    return pl.pallas_call(
        kernel,
        out_shape=jax.ShapeDtypeStruct((B, N, Cout), jnp.float32),
        grid_spec=pltpu.PrefetchScalarGridSpec(
            num_scalar_prefetch=0,
            grid=(G,),
            in_specs=[
                pl.BlockSpec((1, M, K), lambda g: (g, 0, 0)),
                pl.BlockSpec((K, Cout), lambda g: (0, 0)),
                pl.BlockSpec((1, Cout), lambda g: (0, 0)),
                pl.BlockSpec((1, Cout), lambda g: (0, 0)),
            ],
            out_specs=pl.BlockSpec((block_b, N, Cout), lambda g: (g, 0, 0)),
        ),
        compiler_params=pltpu.CompilerParams(
            dimension_semantics=("parallel",)),
    )(patches, w9, scale, shift)


# ----------------------------------------------------------------------------
# Pure-JAX f32 reference for verification.
# ----------------------------------------------------------------------------
def transformation_reference(feat_stu, feat_tea, w_conv, bn_scale, bn_shift):
    def reg(x):
        y = jax.lax.conv_general_dilated(
            x, w_conv, (1, 1), "SAME",
            dimension_numbers=("NCHW", "OIHW", "NCHW"))
        return y * bn_scale[None, :, None, None] + bn_shift[None, :, None, None]

    B, C, H, W = feat_stu.shape
    N = H * W
    f_s = reg(feat_stu).reshape(B, C, N)
    f_t = reg(feat_tea).reshape(B, C, N)
    f_sT = jnp.transpose(f_s, (0, 2, 1))         # (B, N, C)
    sxt = jnp.einsum("bnc,bcm->bnm", f_sT, f_t)  # (B, N, N)
    w = jax.nn.softmax(sxt, axis=1)
    return jnp.einsum("bnm,bmc->bnc", w, f_sT)   # (B, N, C)


if __name__ == "__main__":
    B, C, H, W = 2, 32, 8, 8           # num_input_channels == num_target_channels == C
    key = jax.random.PRNGKey(0)
    k1, k2, k3, k4, k5, k6, k7 = jax.random.split(key, 7)

    feat_stu = jax.random.normal(k1, (B, C, H, W), jnp.float32)
    feat_tea = jax.random.normal(k2, (B, C, H, W), jnp.float32)

    # Conv2d weight, PyTorch OIHW layout, no bias.
    w_conv = jax.random.normal(k3, (C, C, 3, 3), jnp.float32) / jnp.sqrt(9.0 * C)

    # BatchNorm2d parameters (eval-mode fold; see TODO in header).
    gamma = 1.0 + 0.1 * jax.random.normal(k4, (C,), jnp.float32)
    beta = 0.1 * jax.random.normal(k5, (C,), jnp.float32)
    run_mean = 0.05 * jax.random.normal(k6, (C,), jnp.float32)
    run_var = jnp.abs(1.0 + 0.1 * jax.random.normal(k7, (C,), jnp.float32))
    eps = 1e-5
    bn_scale = gamma / jnp.sqrt(run_var + eps)
    bn_shift = beta - run_mean * bn_scale

    ref = transformation_reference(feat_stu, feat_tea, w_conv, bn_scale, bn_shift)

    # 1) f32 operands, block_b=1 (grid=2): tight elementwise check of kernel
    #    structure (im2col ordering, BN fold, softmax axis, second bmm).
    out_f32 = transformation_forward(feat_stu, feat_tea, w_conv, bn_scale,
                                     bn_shift, block_b=1, mm_dtype=jnp.float32)
    out_f32 = jax.block_until_ready(out_f32)
    assert out_f32.shape == (B, H * W, C), out_f32.shape
    assert jnp.allclose(out_f32, ref, atol=2e-3, rtol=2e-3), \
        float(jnp.max(jnp.abs(out_f32 - ref)))

    # 2) f32 operands, block_b=2 (fused M=256 conv matmul, Bt>1 attention
    #    path): same tight check.
    out_f32b = transformation_forward(feat_stu, feat_tea, w_conv, bn_scale,
                                      bn_shift, block_b=2, mm_dtype=jnp.float32)
    out_f32b = jax.block_until_ready(out_f32b)
    assert jnp.allclose(out_f32b, ref, atol=2e-3, rtol=2e-3), \
        float(jnp.max(jnp.abs(out_f32b - ref)))

    # 3) bf16 operands (default fast path, auto block_b): bf16 rounding of the
    #    logits is amplified by exp(), so a normwise relative-error bound is
    #    the right check (structural bugs would give O(1) relative error).
    out_bf16 = transformation_forward(feat_stu, feat_tea, w_conv, bn_scale,
                                      bn_shift, mm_dtype=jnp.bfloat16)
    out_bf16 = jax.block_until_ready(out_bf16)
    assert out_bf16.shape == (B, H * W, C), out_bf16.shape
    rel = jnp.sqrt(jnp.sum((out_bf16 - ref) ** 2)) / jnp.sqrt(jnp.sum(ref ** 2))
    assert float(rel) < 0.1, float(rel)

    print("KERNEL_OK")
</pallas_src>

<mosaic_0001>
module attributes {stable_mosaic.version = 11 : i64} {
  func.func @tat_fused_kernel(%arg0: i32, %arg1: memref<1x128x288xf32, #tpu.memory_space<vmem>>, %arg2: memref<288x32xf32, #tpu.memory_space<vmem>>, %arg3: memref<1x32xf32, #tpu.memory_space<vmem>>, %arg4: memref<1x32xf32, #tpu.memory_space<vmem>>, %arg5: memref<1x64x32xf32, #tpu.memory_space<vmem>>) attributes {dimension_semantics = [#tpu.dimension_semantics<parallel>], iteration_bounds = array<i64: 2>, scalar_prefetch = 0 : i64, scratch_operands = 0 : i64, tpu.core_type = #tpu.core_type<tc>, window_params = [{transform_indices = @transform_0, window_bounds = array<i64: 1, 128, 288>}, {pipeline_mode = #tpu.pipeline_mode<synchronous>, transform_indices = @transform_1, window_bounds = array<i64: 288, 32>}, {pipeline_mode = #tpu.pipeline_mode<synchronous>, transform_indices = @transform_2, window_bounds = array<i64: 1, 32>}, {pipeline_mode = #tpu.pipeline_mode<synchronous>, transform_indices = @transform_3, window_bounds = array<i64: 1, 32>}, {transform_indices = @transform_4, window_bounds = array<i64: 1, 64, 32>}]} {
    %c0 = arith.constant 0 : index
    %c0_0 = arith.constant 0 : index
    %c0_1 = arith.constant 0 : index
    %0 = vector.load %arg1[%c0, %c0_0, %c0_1] : memref<1x128x288xf32, #tpu.memory_space<vmem>>, vector<1x128x288xf32>
    %1 = vector.shape_cast %0 : vector<1x128x288xf32> to vector<128x288xf32>
    %c0_2 = arith.constant 0 : index
    %c0_3 = arith.constant 0 : index
    %2 = vector.load %arg2[%c0_2, %c0_3] : memref<288x32xf32, #tpu.memory_space<vmem>>, vector<288x32xf32>
    %cst = arith.constant dense<0.000000e+00> : vector<128x32xf32>
    %3 = tpu.matmul %1, %2, %cst {dimension_numbers = #tpu.dot_dimension_numbers<[1], [0], [0], [1], [0, 0, 1, 1], [], []>} : vector<128x288xf32>, vector<288x32xf32>, vector<128x32xf32> -> vector<128x32xf32>
    %c0_4 = arith.constant 0 : index
    %c0_5 = arith.constant 0 : index
    %4 = vector.load %arg3[%c0_4, %c0_5] : memref<1x32xf32, #tpu.memory_space<vmem>>, vector<1x32xf32>
    %5 = vector.broadcast %4 : vector<1x32xf32> to vector<128x32xf32>
    %6 = arith.mulf %3, %5 : vector<128x32xf32>
    %c0_6 = arith.constant 0 : index
    %c0_7 = arith.constant 0 : index
    %7 = vector.load %arg4[%c0_6, %c0_7] : memref<1x32xf32, #tpu.memory_space<vmem>>, vector<1x32xf32>
    %8 = vector.broadcast %7 : vector<1x32xf32> to vector<128x32xf32>
    %9 = arith.addf %6, %8 : vector<128x32xf32>
    %10 = vector.extract_strided_slice %9 {offsets = [0, 0], sizes = [64, 32], strides = [1, 1]} : vector<128x32xf32> to vector<64x32xf32>
    %11 = vector.extract_strided_slice %9 {offsets = [64, 0], sizes = [64, 32], strides = [1, 1]} : vector<128x32xf32> to vector<64x32xf32>
    %cst_8 = arith.constant dense<0.000000e+00> : vector<64x64xf32>
    %12 = tpu.matmul %10, %11, %cst_8 {dimension_numbers = #tpu.dot_dimension_numbers<[1], [1], [0], [0], [0, 0, 1, 0], [], []>} : vector<64x32xf32>, vector<64x32xf32>, vector<64x64xf32> -> vector<64x64xf32>
    %cst_9 = arith.constant dense<0xFF800000> : vector<64xf32>
    %13 = vector.multi_reduction <maximumf>, %12, %cst_9 [0] : vector<64x64xf32> to vector<64xf32>
    %14 = vector.shape_cast %13 : vector<64xf32> to vector<1x64xf32>
    %15 = vector.broadcast %14 : vector<1x64xf32> to vector<64x64xf32>
    %16 = arith.subf %12, %15 : vector<64x64xf32>
    %17 = math.exp %16 : vector<64x64xf32>
    %cst_10 = arith.constant dense<0.000000e+00> : vector<64xf32>
    %18 = vector.multi_reduction <add>, %17, %cst_10 [0] : vector<64x64xf32> to vector<64xf32>
    %19 = vector.shape_cast %18 : vector<64xf32> to vector<1x64xf32>
    %20 = tpu.reciprocal %19 : vector<1x64xf32> -> vector<1x64xf32>
    %21 = vector.broadcast %20 : vector<1x64xf32> to vector<64x64xf32>
    %22 = arith.mulf %17, %21 : vector<64x64xf32>
    %cst_11 = arith.constant dense<0.000000e+00> : vector<64x32xf32>
    %23 = tpu.matmul %22, %10, %cst_11 {dimension_numbers = #tpu.dot_dimension_numbers<[1], [0], [0], [1], [0, 0, 1, 1], [], []>} : vector<64x64xf32>, vector<64x32xf32>, vector<64x32xf32> -> vector<64x32xf32>
    %24 = vector.shape_cast %23 : vector<64x32xf32> to vector<1x64x32xf32>
    %c0_12 = arith.constant 0 : index
    %c0_13 = arith.constant 0 : index
    %c0_14 = arith.constant 0 : index
    %25 = vector.load %arg5[%c0_12, %c0_13, %c0_14] : memref<1x64x32xf32, #tpu.memory_space<vmem>>, vector<1x64x32xf32>
    tpu.vector_store %arg5[%c0_12, %c0_13, %c0_14], %24 {strides = array<i32>} : memref<1x64x32xf32, #tpu.memory_space<vmem>>, vector<1x64x32xf32>,
    return
  }
  func.func @transform_0(%arg0: i32) -> (i32, i32, i32) {
    %c0_i32 = arith.constant 0 : i32
    %c0_i32_0 = arith.constant 0 : i32
    %c0_i32_1 = arith.constant 0 : i32
    return %arg0, %c0_i32, %c0_i32_0 : i32, i32, i32
  }
  func.func @transform_1(%arg0: i32) -> (i32, i32) {
    %c0_i32 = arith.constant 0 : i32
    %c0_i32_0 = arith.constant 0 : i32
    %c0_i32_1 = arith.constant 0 : i32
    return %c0_i32, %c0_i32_0 : i32, i32
  }
  func.func @transform_2(%arg0: i32) -> (i32, i32) {
    %c0_i32 = arith.constant 0 : i32
    %c0_i32_0 = arith.constant 0 : i32
    %c0_i32_1 = arith.constant 0 : i32
    return %c0_i32, %c0_i32_0 : i32, i32
  }
  func.func @transform_3(%arg0: i32) -> (i32, i32) {
    %c0_i32 = arith.constant 0 : i32
    %c0_i32_0 = arith.constant 0 : i32
    %c0_i32_1 = arith.constant 0 : i32
    return %c0_i32, %c0_i32_0 : i32, i32
  }
  func.func @transform_4(%arg0: i32) -> (i32, i32, i32) {
    %c0_i32 = arith.constant 0 : i32
    %c0_i32_0 = arith.constant 0 : i32
    %c0_i32_1 = arith.constant 0 : i32
    return %arg0, %c0_i32, %c0_i32_0 : i32, i32, i32
  }
}

</mosaic_0001>

<bundles_post_ra>
// kernel: transformation_forward.1
= control target key start
LH: loop header
LB: loop body
LE: loop exit
PB: predicated region body
PF: predicated region fallthrough
CT: control target
= control target key end

     0   :  { %s1421_s15 = smov 0   ;;  %s1754_s0 = inlined_call_operand.vmem [shape: f32[2,128,288], index: 0, kind: input, shape index: {}]   ;;  %s1755_s1 = inlined_call_operand.vmem [shape: f32[288,32], index: 1, kind: input, shape index: {}]   ;;  %s1756_s2 = inlined_call_operand.vmem [shape: f32[1,32], index: 2, kind: input, shape index: {}]   ;;  %s1757_s3 = inlined_call_operand.vmem [shape: f32[1,32], index: 3, kind: input, shape index: {}]   ;;  %s1758_s4 = inlined_call_operand.vmem [shape: f32[2,64,32], index: 4, kind: output, shape index: {}]  }
   0x1 LB: > { %s1088_s16 = sadd.s32 4294967295, %s1394_s15   ;;  %p1092_p0 = scmp.ge.s32.totalorder %s1394_s15, 1  ;;  %s1394_s15 = sphi %s1421_s15, %s14_s15  }
   0x2   : > { %p162_p1 = scmp.lt.s32.totalorder %s1394_s15, 3 }
   0x4   : > { %p163_p2 = pnand %p1092_p0, %p162_p1 }
   0x5   : > { %p188_p3 = scmp.lt.s32.totalorder (!%p163_p2), %s1088_s16, 1 }
   0x6   : > { %166 = sbr.rel (%p163_p2) target bundleno = 836 (0x344), region = 36 }
   0xb   : > { %v277_v0 = vld [vmem:[%s1755_s1 + $0xf8] sm:$0xff]  ;;  %v276_v2 = vld [vmem:[%s1755_s1 + $0xf0] sm:$0xff]  ;;  %v275_v4 = vld [vmem:[%s1755_s1 + $0xe8] sm:$0xff]  ;;  %s1760_s16 = smov (!%p188_p3, %s1088_s16), 1  ;;  %vm282_vm0 = vcmask 261120   ;;  %vm820_vm1 = vcmask 523264  }
   0xc   : > { %v261_v1 = vld [vmem:[%s1755_s1 + $0x78] sm:$0xff]  ;;  %1141 = vmatprep.subr.mxu0 %v277_v0  ;;  %v260_v3 = vld [vmem:[%s1755_s1 + $0x70] sm:$0xff]  ;;  %v259_v5 = vld [vmem:[%s1755_s1 + $0x68] sm:$0xff]  ;;  %s1361_s7 = smul.u32 384, %s1760_s16 }
   0xd   : > { %1142 = vmatpush3.msra.mxu0 %v261_v1  ;;  %v274_v6 = vld [vmem:[%s1755_s1 + $0xe0] sm:$0xff]  ;;  %v273_v8 = vld [vmem:[%s1755_s1 + $0xd8] sm:$0xff]  ;;  %v272_v10 = vld [vmem:[%s1755_s1 + $0xd0] sm:$0xff] }
   0xe   : > { %1143 = vmatprep.subr.mxu0 %v276_v2  ;;  %v258_v7 = vld [vmem:[%s1755_s1 + $0x60] sm:$0xff]  ;;  %v257_v9 = vld [vmem:[%s1755_s1 + $0x58] sm:$0xff]  ;;  %v256_v11 = vld [vmem:[%s1755_s1 + $0x50] sm:$0xff]  ;;  %s1474_s22 = scalar_lea.vmem %s1754_s0, %s1361_s7 }
   0xf   : > { %1144 = vmatpush3.msra.mxu0 %v260_v3  ;;  %v281_v12 = vld [vmem:[%s1755_s1 + $0x118] sm:$0xff]  ;;  %v271_v13 = vld [vmem:[%s1755_s1 + $0xc8] sm:$0xff]  ;;  %v280_v14 = vld [vmem:[%s1755_s1 + $0x110] sm:$0xff] }
  0x10   : > { %1145 = vmatprep.subr.mxu0 %v275_v4  ;;  %1273 = vmatprep.subr.mxu1 %v281_v12  ;;  %v255_v15 = vld [vmem:[%s1755_s1 + $0x48] sm:$0xff]  ;;  %v270_v17 = vld [vmem:[%s1755_s1 + $0xc0] sm:$0xff]  ;;  %v269_v20 = vld [vmem:[%s1755_s1 + $0xb8] sm:$0xff] }
  0x11   : > { %1146 = vmatpush3.msra.mxu0 %v259_v5  ;;  %1274 = vmatpush3.msra.mxu1 %v281_v12  ;;  %v279_v16 = vld [vmem:[%s1755_s1 + $0x108] sm:$0xff]  ;;  %v254_v19 = vld [vmem:[%s1755_s1 + $0x40] sm:$0xff]  ;;  %v253_v22 = vld [vmem:[%s1755_s1 + $0x38] sm:$0xff] }
  0x12   : > { %1147 = vmatprep.subr.mxu0 %v274_v6  ;;  %1275 = vmatprep.subr.mxu1 %v280_v14  ;;  %v199_v18 = vld [vmem:[%s1474_s22 + $0x8] sm:$0xff]  ;;  %v278_v21 = vld [vmem:[%s1755_s1 + $0x100] sm:$0xff]  ;;  %v268_v23 = vld [vmem:[%s1755_s1 + $0xb0] sm:$0xff] }
  0x13   : > { %1148 = vmatpush3.msra.mxu0 %v258_v7  ;;  %1276 = vmatpush3.msra.mxu1 %v280_v14  ;;  %v200_v24 = vld [vmem:[%s1474_s22 + $0x10] sm:$0xff]  ;;  %v203_v26 = vld [vmem:[%s1474_s22 + $0x28] sm:$0xff]  ;;  %v206_v28 = vld [vmem:[%s1474_s22 + $0x40] sm:$0xff] }
  0x14   : > { %1149 = vmatprep.subr.mxu0 %v273_v8  ;;  %1277 = vmatprep.subr.mxu1 %v279_v16  ;;  %v252_v25 = vld [vmem:[%s1755_s1 + $0x30] sm:$0xff]  ;;  %v267_v27 = vld [vmem:[%s1755_s1 + $0xa8] sm:$0xff]  ;;  %v266_v30 = vld [vmem:[%s1755_s1 + $0xa0] sm:$0xff] }
  0x15   : > { %1150 = vmatpush3.msra.mxu0 %v257_v9  ;;  %395 = vmatprep.mubr.f32.mxu0 %v199_v18  ;;  %v251_v29 = vld [vmem:[%s1755_s1 + $0x28] sm:$0xff]  ;;  %v250_v31 = vld [vmem:[%s1755_s1 + $0x20] sm:$0xff]  ;;  %v209_v32 = vld [vmem:[%s1474_s22 + $0x58] sm:$0xff] }
  0x16   : > { %1151 = vmatprep.subr.mxu0 %v272_v10  ;;  %1278 = vmatpush3.msra.mxu1 %v279_v16  ;;  %v265_v33 = vld [vmem:[%s1755_s1 + $0x98] sm:$0xff]  ;;  %v212_v34 = vld [vmem:[%s1474_s22 + $0x70] sm:$0xff]  ;;  %v215_v38 = vld [vmem:[%s1474_s22 + $0x88] sm:$0xff] }
  0x17   : > { %1152 = vmatpush3.msra.mxu0 %v256_v11  ;;  %1279 = vmatprep.subr.mxu1 %v278_v21  ;;  %v249_v35 = vld [vmem:[%s1755_s1 + $0x18] sm:$0xff]  ;;  %v264_v36 = vld [vmem:[%s1755_s1 + $0x90] sm:$0xff]  ;;  %v263_v39 = vld [vmem:[%s1755_s1 + $0x88] sm:$0xff] }
  0x18   : > { %1153 = vmatprep.subr.mxu0 %v271_v13  ;;  %1280 = vmatpush3.msra.mxu1 %v278_v21  ;;  %v248_v37 = vld [vmem:[%s1755_s1 + $0x10] sm:$0xff]  ;;  %v218_v40 = vld [vmem:[%s1474_s22 + $0xa0] sm:$0xff]  ;;  %v247_v41 = vld [vmem:[%s1755_s1 + $0x8] sm:$0xff] }
  0x19   : > { %1154 = vmatpush3.msra.mxu0 %v255_v15  ;;  %1281 = vmatprep.mubr.msk.f32.mxu1 %vm282_vm0, %v200_v24  ;;  %v262_v42 = vld [vmem:[%s1755_s1 + $0x80] sm:$0xff]  ;;  %v221_v44 = vld [vmem:[%s1474_s22 + $0xb8] sm:$0xff]  ;;  %v224_v46 = vld [vmem:[%s1474_s22 + $0xd0] sm:$0xff] }
  0x1a   : > { %1155 = vmatprep.subr.mxu0 %v270_v17  ;;  %1282 = vmatmul.mubr.msk.f32.vlgmr.msra.gmra.mxu1 %vm282_vm0, %v203_v26  ;;  %v246_v43 = vld [vmem:[%s1755_s1] sm:$0xff]  ;;  %v227_v48 = vld [vmem:[%s1474_s22 + $0xe8] sm:$0xff]  ;;  %v201_v49 = vld [vmem:[%s1474_s22 + $0x18] sm:$0xff] }
  0x1b   : > { %1156 = vmatpush3.msra.mxu0 %v254_v19  ;;  %1284 = vmatprep.mubr.msk.f32.mxu1 %vm282_vm0, %v206_v28  ;;  %v198_v45 = vld [vmem:[%s1474_s22] sm:$0xff]  ;;  %v205_v51 = vld [vmem:[%s1474_s22 + $0x38] sm:$0xff]  ;;  %v204_v53 = vld [vmem:[%s1474_s22 + $0x30] sm:$0xff] }
  0x1c   : > { %1157 = vmatprep.subr.mxu0 %v269_v20  ;;  %v202_v47 = vld [vmem:[%s1474_s22 + $0x20] sm:$0xff]  ;;  %v233_v52 = vld [vmem:[%s1474_s22 + $0x118] sm:$0xff]  ;;  %v236_v54 = vld [vmem:[%s1474_s22 + $0x130] sm:$0xff] }
  0x1d   : > { %1158 = vmatpush3.msra.mxu0 %v253_v22  ;;  %v230_v50 = vld [vmem:[%s1474_s22 + $0x100] sm:$0xff]  ;;  %v208_v55 = vld [vmem:[%s1474_s22 + $0x50] sm:$0xff]  ;;  %v239_v56 = vld [vmem:[%s1474_s22 + $0x148] sm:$0xff] }
  0x1e   : > { %1159 = vmatprep.subr.mxu0 %v268_v23  ;;  %1285 = vmatmul.mubr.msk.f32.gmra.mxu1 %vm282_vm0, %v209_v32  ;;  %v207_v57 = vld [vmem:[%s1474_s22 + $0x48] sm:$0xff]  ;;  %v242_v58 = vld [vmem:[%s1474_s22 + $0x160] sm:$0xff]  ;;  %v245_v60 = vld [vmem:[%s1474_s22 + $0x178] sm:$0xff] }
  0x1f   : > { %1160 = vmatpush3.msra.mxu0 %v252_v25  ;;  %1287 = vmatprep.mubr.msk.f32.mxu1 %vm282_vm0, %v212_v34  ;;  %v211_v59 = vld [vmem:[%s1474_s22 + $0x68] sm:$0xff]  ;;  %v210_v61 = vld [vmem:[%s1474_s22 + $0x60] sm:$0xff]  ;;  %v213_v63 = vld [vmem:[%s1474_s22 + $0x78] sm:$0xff] }
  0x20   : > { %1161 = vmatprep.subr.mxu0 %v267_v27  ;;  %v214_v62 = vld [vmem:[%s1474_s22 + $0x80] sm:$0xff]  ;;  %v217_v0 = vld [vmem:[%s1474_s22 + $0x98] sm:$0xff]  ;;  %v216_v1 = vld [vmem:[%s1474_s22 + $0x90] sm:$0xff] }
  0x21   : > { %1162 = vmatpush3.msra.mxu0 %v251_v29  ;;  %v220_v2 = vld [vmem:[%s1474_s22 + $0xb0] sm:$0xff]  ;;  %v219_v3 = vld [vmem:[%s1474_s22 + $0xa8] sm:$0xff]  ;;  %v222_v5 = vld [vmem:[%s1474_s22 + $0xc0] sm:$0xff] }
  0x22   : > { %1163 = vmatprep.subr.mxu0 %v266_v30  ;;  %1288 = vmatmul.mubr.msk.f32.gmra.mxu1 %vm282_vm0, %v215_v38  ;;  %v223_v4 = vld [vmem:[%s1474_s22 + $0xc8] sm:$0xff]  ;;  %v226_v6 = vld [vmem:[%s1474_s22 + $0xe0] sm:$0xff]  ;;  %v225_v7 = vld [vmem:[%s1474_s22 + $0xd8] sm:$0xff] }
  0x23   : > { %1164 = vmatpush3.msra.mxu0 %v250_v31  ;;  %1290 = vmatprep.mubr.msk.f32.mxu1 %vm282_vm0, %v218_v40  ;;  %v229_v8 = vld [vmem:[%s1474_s22 + $0xf8] sm:$0xff]  ;;  %v228_v9 = vld [vmem:[%s1474_s22 + $0xf0] sm:$0xff]  ;;  %v231_v11 = vld [vmem:[%s1474_s22 + $0x108] sm:$0xff] }
  0x24   : > { %1165 = vmatprep.subr.mxu0 %v265_v33  ;;  %v232_v10 = vld [vmem:[%s1474_s22 + $0x110] sm:$0xff]  ;;  %v235_v12 = vld [vmem:[%s1474_s22 + $0x128] sm:$0xff]  ;;  %v234_v13 = vld [vmem:[%s1474_s22 + $0x120] sm:$0xff] }
  0x25   : > { %1166 = vmatpush3.msra.mxu0 %v249_v35  ;;  %v238_v14 = vld [vmem:[%s1474_s22 + $0x140] sm:$0xff]  ;;  %v237_v15 = vld [vmem:[%s1474_s22 + $0x138] sm:$0xff]  ;;  %v240_v17 = vld [vmem:[%s1474_s22 + $0x150] sm:$0xff] }
  0x26   : > { %1167 = vmatprep.subr.mxu0 %v264_v36  ;;  %1291 = vmatmul.mubr.msk.f32.gmra.mxu1 %vm282_vm0, %v221_v44  ;;  %v241_v16 = vld [vmem:[%s1474_s22 + $0x158] sm:$0xff]  ;;  %v244_v18 = vld [vmem:[%s1474_s22 + $0x170] sm:$0xff]  ;;  %v243_v19 = vld [vmem:[%s1474_s22 + $0x168] sm:$0xff]  ;;  %s1140_s22 = sshll.u32 %s1760_s16, 6 }
  0x27   : > { %1168 = vmatpush3.msra.mxu0 %v248_v37  ;;  %1293 = vmatprep.mubr.msk.f32.mxu1 %vm282_vm0, %v224_v46  ;;  %v1612_v26 = vld [vmem:[%s1756_s2] ss:$0 sm:$0xff]  ;;  %s197_s29 = scalar_lea.vmem %s1758_s4, %s1140_s22 }
  0x28   : > { %1169 = vmatprep.subr.mxu0 %v263_v39  ;;  %v1617_v28 = vld [vmem:[%s1757_s3] ss:$0 sm:$0xff] }
  0x29   : > { %1170 = vmatpush3.msra.mxu0 %v247_v41 }
  0x2a   : > { %1171 = vmatprep.subr.mxu0 %v262_v42  ;;  %1294 = vmatmul.mubr.msk.f32.gmra.mxu1 %vm282_vm0, %v227_v48 }
  0x2b   : > { %1172 = vmatpush3.msra.mxu0 %v246_v43  ;;  %1296 = vmatprep.mubr.msk.f32.mxu1 %vm282_vm0, %v230_v50 }
  0x2c   : > { %396 = vmatmul.mubr.f32.vlgmr.msra.gmra.mxu0 %v198_v45 }
  0x2d   : > { %400 = vmatprep.mubr.f32.mxu0 %v202_v47 }
  0x2e   : > { %1297 = vmatmul.mubr.msk.f32.gmra.mxu1 %vm282_vm0, %v233_v52 }
  0x2f   : > { %1299 = vmatprep.mubr.msk.f32.mxu1 %vm282_vm0, %v236_v54 }
  0x30   : > { %401 = vmatmul.mubr.f32.gmra.mxu0 %v201_v49 }
  0x31   : > { %405 = vmatprep.mubr.f32.mxu0 %v205_v51 }
  0x32   : > { %1300 = vmatmul.mubr.msk.f32.gmra.mxu1 %vm282_vm0, %v239_v56 }
  0x33   : > { %1302 = vmatprep.mubr.msk.f32.mxu1 %vm282_vm0, %v242_v58 }
  0x34   : > { %406 = vmatmul.mubr.f32.gmra.mxu0 %v204_v53 }
  0x35   : > { %410 = vmatprep.mubr.f32.mxu0 %v208_v55 }
  0x36   : > { %1303 = vmatmul.mubr.msk.f32.gmra.mxu1 %vm282_vm0, %v245_v60 }
  0x38   : > { %411 = vmatmul.mubr.f32.gmra.mxu0 %v207_v57 }
  0x39   : > { %415 = vmatprep.mubr.f32.mxu0 %v211_v59 }
  0x3c   : > { %416 = vmatmul.mubr.f32.gmra.mxu0 %v210_v61 }
  0x3d   : > { %420 = vmatprep.mubr.f32.mxu0 %v214_v62 }
  0x40   : > { %421 = vmatmul.mubr.f32.gmra.mxu0 %v213_v63 }
  0x41   : > { %425 = vmatprep.mubr.f32.mxu0 %v217_v0 }
  0x44   : > { %426 = vmatmul.mubr.f32.gmra.mxu0 %v216_v1 }
  0x45   : > { %430 = vmatprep.mubr.f32.mxu0 %v220_v2 }
  0x48   : > { %431 = vmatmul.mubr.f32.gmra.mxu0 %v219_v3 }
  0x49   : > { %435 = vmatprep.mubr.f32.mxu0 %v223_v4 }
  0x4c   : > { %436 = vmatmul.mubr.f32.gmra.mxu0 %v222_v5 }
  0x4d   : > { %440 = vmatprep.mubr.f32.mxu0 %v226_v6 }
  0x50   : > { %441 = vmatmul.mubr.f32.gmra.mxu0 %v225_v7 }
  0x51   : > { %445 = vmatprep.mubr.f32.mxu0 %v229_v8 }
  0x54   : > { %446 = vmatmul.mubr.f32.gmra.mxu0 %v228_v9 }
  0x55   : > { %450 = vmatprep.mubr.f32.mxu0 %v232_v10 }
  0x58   : > { %451 = vmatmul.mubr.f32.gmra.mxu0 %v231_v11 }
  0x59   : > { %455 = vmatprep.mubr.f32.mxu0 %v235_v12 }
  0x5c   : > { %456 = vmatmul.mubr.f32.gmra.mxu0 %v234_v13 }
  0x5d   : > { %460 = vmatprep.mubr.f32.mxu0 %v238_v14 }
  0x60   : > { %461 = vmatmul.mubr.f32.gmra.mxu0 %v237_v15 }
  0x61   : > { %465 = vmatprep.mubr.f32.mxu0 %v241_v16 }
  0x64   : > { %466 = vmatmul.mubr.f32.gmra.mxu0 %v240_v17 }
  0x65   : > { %470 = vmatprep.mubr.f32.mxu0 %v244_v18 }
  0x68   : > { %471 = vmatmul.mubr.f32.gmra.mxu0 %v243_v19 }
  0xda   : > { %v1283_v20 = vpop.f32.mrf.mxu1 }
  0xdc   : > { %v542_v23 = vpop.f32.mrf.mxu1 }
  0xde   : > { %v1286_v30 = vpop.f32.mrf.mxu1 }
  0xe0   : > { %v552_v37 = vpop.f32.mrf.mxu1 }
  0xe2   : > { %v1289_v44 = vpop.f32.mrf.mxu1 }
  0xe4   : > { %v562_v51 = vpop.f32.mrf.mxu1 }
  0xe6   : > { %v1292_v58 = vpop.f32.mrf.mxu1 }
  0xe8   : > { %v572_v1 = vpop.f32.mrf.mxu1 }
  0xea   : > { %v1295_v8 = vpop.f32.mrf.mxu1 }
  0xec   : > { %v1173_v21 = vpop.f32.mrf.mxu0  ;;  %v582_v15 = vpop.f32.mrf.mxu1 }
  0xee   : > { %v1174_v22 = vpop.f32.mrf.mxu0 }
  0xef   : > { %v1175_v24 = vadd.f32 %v1174_v22, %v1173_v21  ;;  %v1298_v22 = vpop.f32.mrf.mxu1 }
  0xf0   : > { %v1176_v25 = vpop.f32.mrf.mxu0 }
  0xf1   : > { %v543_v27 = vadd.f32 %v1175_v24, %v542_v23 }
  0xf2   : > { %v1177_v29 = vpop.f32.mrf.mxu0 }
  0xf3   : > { %v628_v31 = vmul.f32 %v1612_v26, %v543_v27  ;;  %v1178_v32 = vadd.f32 %v1177_v29, %v1176_v25 }
  0xf4   : > { %v1179_v33 = vpop.f32.mrf.mxu0 }
  0xf5   : > { %v1621_v34 = vadd.f32 %v1617_v28, %v628_v31  ;;  %v548_v35 = vadd.f32 %v1283_v20, %v1178_v32  ;;  %v592_v31 = vpop.f32.mrf.mxu1 }
  0xf6   : > { %v1180_v36 = vpop.f32.mrf.mxu0 }
  0xf7   : > { %v629_v38 = vmul.f32 %v1612_v26, %v548_v35  ;;  %v1181_v39 = vadd.f32 %v1180_v36, %v1179_v33  ;;  %1321 = vmatprep.mubr.msk.f32.mxu1 %vm282_vm0, %v1621_v34 }
  0xf8   : > { %v1182_v40 = vpop.f32.mrf.mxu0 }
  0xf9   : > { %v1627_v41 = vadd.f32 %v1617_v28, %v629_v38  ;;  %v553_v42 = vadd.f32 %v1181_v39, %v552_v37  ;;  %v1301_v39 = vpop.f32.mrf.mxu1 }
  0xfa   : > { %v1183_v43 = vpop.f32.mrf.mxu0 }
  0xfb   : > { %v630_v45 = vmul.f32 %v1612_v26, %v553_v42  ;;  %v1184_v46 = vadd.f32 %v1183_v43, %v1182_v40 }
  0xfc   : > { %v1185_v47 = vpop.f32.mrf.mxu0 }
  0xfd   : > { %v1631_v48 = vadd.f32 %v1617_v28, %v630_v45  ;;  %v558_v49 = vadd.f32 %v1286_v30, %v1184_v46 }
  0xfe   : > { %v1186_v50 = vpop.f32.mrf.mxu0 }
  0xff   : > { %v631_v52 = vmul.f32 %v1612_v26, %v558_v49  ;;  %v1187_v53 = vadd.f32 %v1186_v50, %v1185_v47  ;;  %v602_v47 = vpop.f32.mrf.mxu1 }
 0x100   : > { %v1188_v54 = vpop.f32.mrf.mxu0 }
 0x101   : > { %v1635_v55 = vadd.f32 %v1617_v28, %v631_v52  ;;  %v563_v56 = vadd.f32 %v1187_v53, %v562_v51 }
 0x102   : > { %v1189_v57 = vpop.f32.mrf.mxu0 }
 0x103   : > { %v632_v59 = vmul.f32 %v1612_v26, %v563_v56  ;;  %v1190_v60 = vadd.f32 %v1189_v57, %v1188_v54 }
 0x104   : > { %v1191_v61 = vpop.f32.mrf.mxu0 }
 0x105   : > { %v1639_v62 = vadd.f32 %v1617_v28, %v632_v59  ;;  %v568_v63 = vadd.f32 %v1289_v44, %v1190_v60  ;;  %v1304_v59 = vpop.f32.mrf.mxu1 }
 0x106   : > { %v1192_v0 = vpop.f32.mrf.mxu0 }
 0x107   : > { %v633_v2 = vmul.f32 %v1612_v26, %v568_v63  ;;  %v1193_v3 = vadd.f32 %v1192_v0, %v1191_v61 }
 0x108   : > { %v1194_v4 = vpop.f32.mrf.mxu0 }
 0x109   : > { %v573_v5 = vadd.f32 %v1193_v3, %v572_v1  ;;  %v1643_v6 = vadd.f32 %v1617_v28, %v633_v2  ;;  %v612_v3 = vpop.f32.mrf.mxu1 }
 0x10a   : > { %v1195_v7 = vpop.f32.mrf.mxu0 }
 0x10b   : > { %v634_v9 = vmul.f32 %v1612_v26, %v573_v5  ;;  %v1196_v10 = vadd.f32 %v1195_v7, %v1194_v4 }
 0x10c   : > { %v1197_v11 = vpop.f32.mrf.mxu0 }
 0x10d   : > { %v578_v12 = vadd.f32 %v1292_v58, %v1196_v10  ;;  %v1647_v13 = vadd.f32 %v1617_v28, %v634_v9 }
 0x10e   : > { %v1198_v14 = vpop.f32.mrf.mxu0 }
 0x10f   : > { %v635_v16 = vmul.f32 %v1612_v26, %v578_v12  ;;  %v1199_v17 = vadd.f32 %v1198_v14, %v1197_v11 }
 0x110   : > { %v1200_v18 = vpop.f32.mrf.mxu0 }
 0x111   : > { %v583_v19 = vadd.f32 %v1199_v17, %v582_v15  ;;  %v1651_v20 = vadd.f32 %v1617_v28, %v635_v16 }
 0x112   : > { %v1201_v21 = vpop.f32.mrf.mxu0 }
 0x113   : > { %v636_v23 = vmul.f32 %v1612_v26, %v583_v19  ;;  %v1202_v24 = vadd.f32 %v1201_v21, %v1200_v18 }
 0x114   : > { %v1203_v25 = vpop.f32.mrf.mxu0 }
 0x115   : > { %v659_v27 = vadd.f32 %v1617_v28, %v636_v23  ;;  %v588_v29 = vadd.f32 %v1295_v8, %v1202_v24 }
 0x116   : > { %v1204_v30 = vpop.f32.mrf.mxu0 }
 0x117   : > { %v637_v32 = vmul.f32 %v1612_v26, %v588_v29  ;;  %v1205_v33 = vadd.f32 %v1204_v30, %v1203_v25 }
 0x118   : > { %v1206_v35 = vpop.f32.mrf.mxu0 }
 0x119   : > { %v660_v36 = vadd.f32 %v1617_v28, %v637_v32  ;;  %v593_v37 = vadd.f32 %v1205_v33, %v592_v31 }
 0x11a   : > { %v1207_v38 = vpop.f32.mrf.mxu0 }
 0x11b   : > { %v638_v40 = vmul.f32 %v1612_v26, %v593_v37  ;;  %v1208_v42 = vadd.f32 %v1207_v38, %v1206_v35 }
 0x11c   : > { %v1209_v43 = vpop.f32.mrf.mxu0 }
 0x11d   : > { %v661_v44 = vadd.f32 %v1617_v28, %v638_v40  ;;  %v598_v45 = vadd.f32 %v1298_v22, %v1208_v42 }
 0x11e   : > { %v1210_v46 = vpop.f32.mrf.mxu0 }
 0x11f   : > { %v639_v49 = vmul.f32 %v1612_v26, %v598_v45  ;;  %v1211_v50 = vadd.f32 %v1210_v46, %v1209_v43 }
 0x120   : > { %v1212_v51 = vpop.f32.mrf.mxu0 }
 0x121   : > { %v662_v52 = vadd.f32 %v1617_v28, %v639_v49  ;;  %v603_v53 = vadd.f32 %v1211_v50, %v602_v47 }
 0x122   : > { %v1213_v54 = vpop.f32.mrf.mxu0 }
 0x123   : > { %v640_v56 = vmul.f32 %v1612_v26, %v603_v53  ;;  %v1214_v57 = vadd.f32 %v1213_v54, %v1212_v51 }
 0x124   : > { %v1215_v58 = vpop.f32.mrf.mxu0 }
 0x125   : > { %v663_v60 = vadd.f32 %v1617_v28, %v640_v56  ;;  %v608_v61 = vadd.f32 %v1301_v39, %v1214_v57 }
 0x126   : > { %v1216_v63 = vpop.f32.mrf.mxu0 }
 0x127   : > { %v641_v0 = vmul.f32 %v1612_v26, %v608_v61  ;;  %v1217_v1 = vadd.f32 %v1216_v63, %v1215_v58 }
 0x128   : > { %v1218_v2 = vpop.f32.mrf.mxu0 }
 0x129   : > { %v664_v4 = vadd.f32 %v1617_v28, %v641_v0  ;;  %v613_v7 = vadd.f32 %v1217_v1, %v612_v3 }
 0x12a   : > { %v1219_v5 = vpop.f32.mrf.mxu0 }
 0x12b   : > { %v1220_v8 = vadd.f32 %v1219_v5, %v1218_v2  ;;  %v642_v10 = vmul.f32 %v1612_v26, %v613_v7 }
 0x12d   : > { %v618_v9 = vadd.f32 %v1304_v59, %v1220_v8  ;;  %v665_v14 = vadd.f32 %v1617_v28, %v642_v10 }
 0x12f   : > { %v643_v11 = vmul.f32 %v1612_v26, %v618_v9 }
 0x131   : > { %v666_v12 = vadd.f32 %v1617_v28, %v643_v11 }
 0x133   : > { %1305 = vmatprep.subr.msk.mxu1 %vm282_vm0, %v666_v12 }
 0x134   : > { %1306 = vmatpush3.xpose.msk.msra.mxu1 %vm282_vm0, %v666_v12 }
 0x135   : > { %1307 = vmatprep.subr.msk.mxu1 %vm282_vm0, %v665_v14 }
 0x138   : > { %1308 = vmatpush3.xpose.msk.msra.mxu1 %vm282_vm0, %v665_v14 }
 0x139   : > { %1309 = vmatprep.subr.msk.mxu1 %vm282_vm0, %v664_v4 }
 0x13c   : > { %1310 = vmatpush3.xpose.msk.msra.mxu1 %vm282_vm0, %v664_v4 }
 0x13d   : > { %1311 = vmatprep.subr.msk.mxu1 %vm282_vm0, %v663_v60 }
 0x140   : > { %1312 = vmatpush3.xpose.msk.msra.mxu1 %vm282_vm0, %v663_v60 }
 0x141   : > { %1313 = vmatprep.subr.msk.mxu1 %vm282_vm0, %v662_v52 }
 0x144   : > { %1314 = vmatpush3.xpose.msk.msra.mxu1 %vm282_vm0, %v662_v52 }
 0x145   : > { %1315 = vmatprep.subr.msk.mxu1 %vm282_vm0, %v661_v44 }
 0x148   : > { %1316 = vmatpush3.xpose.msk.msra.mxu1 %vm282_vm0, %v661_v44 }
 0x149   : > { %1317 = vmatprep.subr.msk.mxu1 %vm282_vm0, %v660_v36 }
 0x14c   : > { %1318 = vmatpush3.xpose.msk.msra.mxu1 %vm282_vm0, %v660_v36 }
 0x14d   : > { %1319 = vmatprep.subr.msk.mxu1 %vm282_vm0, %v659_v27 }
 0x150   : > { %1320 = vmatpush3.xpose.msk.msra.mxu1 %vm282_vm0, %v659_v27 }
 0x151   : > { %1333 = vmatprep.subr.mxu1 %v1651_v20 }
 0x153   : > { %1322 = vmatmul.mubr.msk.f32.vlgmr.msra.gmra.mxu1 %vm282_vm0, %v1627_v41 }
 0x154   : > { %1324 = vmatprep.mubr.msk.f32.mxu1 %vm282_vm0, %v1631_v48  ;;  %1334 = vmatpush3.msra.mxu1 %v1651_v20 }
 0x155   : > { %1335 = vmatprep.subr.mxu1 %v1647_v13 }
 0x156   : > { %1336 = vmatpush3.msra.mxu1 %v1647_v13 }
 0x157   : > { %1325 = vmatmul.mubr.msk.f32.gmra.mxu1 %vm282_vm0, %v1635_v55  ;;  %1337 = vmatprep.subr.mxu1 %v1643_v6 }
 0x158   : > { %1327 = vmatprep.mubr.msk.f32.mxu1 %vm282_vm0, %v1639_v62  ;;  %1338 = vmatpush3.msra.mxu1 %v1643_v6 }
 0x159   : > { %1339 = vmatprep.subr.mxu1 %v1639_v62 }
 0x15a   : > { %1340 = vmatpush3.msra.mxu1 %v1639_v62 }
 0x15b   : > { %1328 = vmatmul.mubr.msk.f32.gmra.mxu1 %vm282_vm0, %v1643_v6  ;;  %1341 = vmatprep.subr.mxu1 %v1635_v55 }
 0x15c   : > { %1330 = vmatprep.mubr.msk.f32.mxu1 %vm282_vm0, %v1647_v13  ;;  %1342 = vmatpush3.msra.mxu1 %v1635_v55 }
 0x15d   : > { %1343 = vmatprep.subr.mxu1 %v1631_v48 }
 0x15e   : > { %1344 = vmatpush3.msra.mxu1 %v1631_v48 }
 0x15f   : > { %1331 = vmatmul.mubr.msk.f32.gmra.mxu1 %vm282_vm0, %v1651_v20  ;;  %1345 = vmatprep.subr.mxu1 %v1627_v41 }
 0x160   : > { %1346 = vmatpush3.msra.mxu1 %v1627_v41 }
 0x161   : > { %1347 = vmatprep.subr.mxu1 %v1621_v34 }
 0x162   : > { %1348 = vmatpush3.msra.mxu1 %v1621_v34 }
 0x213   : > { %v1323_v26 = vpop.f32.mrf.mxu1 }
 0x214   : > { %v822_v34 = vsel %vm820_vm1, %v1323_v26, -inf }
 0x215   : > { %v781_v28 = vpop.f32.mrf.mxu1 }
 0x216   : > { %v821_v16 = vsel %vm820_vm1, %v781_v28, -inf }
 0x217   : > { %v1326_v62 = vpop.f32.mrf.mxu1 }
 0x218   : > { %v824_v20 = vsel %vm820_vm1, %v1326_v62, -inf }
 0x219   : > { %v791_v6 = vpop.f32.mrf.mxu1 }
 0x21a   : > { %v823_v21 = vsel %vm820_vm1, %v791_v6, -inf }
 0x21b   : > { %v1329_v55 = vpop.f32.mrf.mxu1 }
 0x21c   : > { %v827_v17 = vsel %vm820_vm1, %v1329_v55, -inf }
 0x21d   : > { %v801_v13 = vpop.f32.mrf.mxu1  ;;  %v828_v23 = vmax.f32 %v822_v34, %v827_v17 }
 0x21e   : > { %v825_v48 = vsel %vm820_vm1, %v801_v13, -inf }
 0x21f   : > { %v1332_v15 = vpop.f32.mrf.mxu1  ;;  %v826_v18 = vmax.f32 %v821_v16, %v825_v48 }
 0x220   : > { %v831_v41 = vsel %vm820_vm1, %v1332_v15, -inf }
 0x221   : > { %v811_v19 = vpop.f32.mrf.mxu1  ;;  %v832_v24 = vmax.f32 %v824_v20, %v831_v41  ;;  %v833_v27 = vmax.f32 %v826_v18, %v828_v23 }
 0x222   : > { %v829_v22 = vsel %vm820_vm1, %v811_v19, -inf }
 0x223   : > { %v830_v25 = vmax.f32 %v823_v21, %v829_v22 }
 0x225   : > { %v834_v29 = vmax.f32 %v830_v25, %v832_v24 }
 0x227   : > { %v835_v30 = vmax.f32 %v833_v27, %v834_v29 }
 0x229   : > { %v836_v31 = vrot.slane %v835_v30, 4 }
 0x22b   : > { %v837_v32 = vmax.f32 %v835_v30, %v836_v31 }
 0x22d   : > { %v838_v33 = vrot.slane %v837_v32, 2 }
 0x22f   : > { %v839_v35 = vmax.f32 %v837_v32, %v838_v33 }
 0x231   : > { %v840_v36 = vrot.slane %v839_v35, 1 }
 0x233   : > { %v841_v37 = vmax.f32 %v839_v35, %v840_v36 }
 0x235   : > { %v842_v38 = vsub.f32 %v781_v28, %v841_v37  ;;  %v843_v39 = vsub.f32 %v1323_v26, %v841_v37  ;;  %v844_v40 = vsub.f32 %v791_v6, %v841_v37  ;;  %v845_v42 = vsub.f32 %v1326_v62, %v841_v37 }
 0x236   : > { %v846_v43 = vsub.f32 %v801_v13, %v841_v37  ;;  %v847_v47 = vsub.f32 %v1329_v55, %v841_v37  ;;  %v848_v50 = vsub.f32 %v811_v19, %v841_v37  ;;  %v849_v52 = vsub.f32 %v1332_v15, %v841_v37 }
 0x237   : > { %v850_v44 = vmul.f32 1.442695, %v842_v38  ;;  %v852_v45 = vmul.f32 1.442695, %v843_v39  ;;  %v854_v46 = vmul.f32 1.442695, %v844_v40 }
 0x238   : > { %v856_v49 = vmul.f32 1.442695, %v845_v42  ;;  %v858_v51 = vmul.f32 1.442695, %v846_v43  ;;  %v860_v53 = vmul.f32 1.442695, %v847_v47 }
 0x239   : > { %1370 = vpow2.f32 %v850_v44  ;;  %v862_v54 = vmul.f32 1.442695, %v848_v50  ;;  %v864_v56 = vmul.f32 1.442695, %v849_v52 }
 0x23a   : > { %1372 = vpow2.f32 %v852_v45 }
 0x23b   : > { %1374 = vpow2.f32 %v854_v46 }
 0x23c   : > { %1376 = vpow2.f32 %v856_v49 }
 0x23d   : > { %1378 = vpow2.f32 %v858_v51 }
 0x23e   : > { %1380 = vpow2.f32 %v860_v53 }
 0x23f   : > { %1382 = vpow2.f32 %v862_v54 }
 0x240   : > { %1384 = vpow2.f32 %v864_v56 }
 0x246   : > { %v1371_v57 = vpop.eup %1370 }
 0x247   : > { %v1373_v58 = vpop.eup %1372  ;;  %v866_v59 = vsel %vm820_vm1, %v1371_v57, 0.0 }
 0x248   : > { %v1375_v60 = vpop.eup %1374  ;;  %v867_v61 = vsel %vm820_vm1, %v1373_v58, 0.0 }
 0x249   : > { %v1377_v63 = vpop.eup %1376  ;;  %v868_v0 = vadd.f32 %v867_v61, %v866_v59  ;;  %v869_v1 = vsel %vm820_vm1, %v1375_v60, 0.0 }
 0x24a   : > { %v1379_v2 = vpop.eup %1378  ;;  %v871_v4 = vsel %vm820_vm1, %v1377_v63, 0.0 }
 0x24b   : > { %v870_v3 = vadd.f32 %v869_v1, %v868_v0  ;;  %v1381_v5 = vpop.eup %1380  ;;  %v873_v8 = vsel %vm820_vm1, %v1379_v2, 0.0 }
 0x24c   : > { %v1383_v9 = vpop.eup %1382  ;;  %v875_v11 = vsel %vm820_vm1, %v1381_v5, 0.0 }
 0x24d   : > { %v872_v7 = vadd.f32 %v871_v4, %v870_v3  ;;  %v1385_v12 = vpop.eup %1384  ;;  %v877_v26 = vsel %vm820_vm1, %v1383_v9, 0.0 }
 0x24e   : > { %v879_v62 = vsel %vm820_vm1, %v1385_v12, 0.0 }
 0x24f   : > { %v874_v10 = vadd.f32 %v873_v8, %v872_v7 }
 0x251   : > { %v876_v14 = vadd.f32 %v875_v11, %v874_v10 }
 0x253   : > { %v878_v28 = vadd.f32 %v877_v26, %v876_v14 }
 0x255   : > { %v880_v6 = vadd.f32 %v879_v62, %v878_v28 }
 0x257   : > { %v881_v55 = vrot.slane %v880_v6, 4 }
 0x259   : > { %v882_v13 = vadd.f32 %v881_v55, %v880_v6 }
 0x25b   : > { %v883_v48 = vrot.slane %v882_v13, 2 }
 0x25d   : > { %v884_v15 = vadd.f32 %v883_v48, %v882_v13 }
 0x25f   : > { %v885_v16 = vrot.slane %v884_v15, 1 }
 0x261   : > { %v886_v17 = vadd.f32 %v885_v16, %v884_v15 }
 0x263   : > { %1386 = vrcp.f32 %v886_v17 }
 0x270   : > { %v1387_v41 = vpop.eup %1386 }
 0x271   : > { %v888_v18 = vmul.f32 %v1387_v41, %v1371_v57  ;;  %v889_v19 = vmul.f32 %v1387_v41, %v1373_v58  ;;  %v890_v34 = vmul.f32 %v1387_v41, %v1375_v60  ;;  %v891_v20 = vmul.f32 %v1387_v41, %v1377_v63 }
 0x272   : > { %v892_v21 = vmul.f32 %v1387_v41, %v1379_v2  ;;  %v893_v22 = vmul.f32 %v1387_v41, %v1381_v5  ;;  %v894_v23 = vmul.f32 %v1387_v41, %v1383_v9  ;;  %v895_v24 = vmul.f32 %v1387_v41, %v1385_v12 }
 0x273   : > { %1349 = vmatprep.mubr.msk.f32.mxu1 %vm820_vm1, %v888_v18 }
 0x274   : > { %1350 = vmatmul.mubr.msk.f32.vlgmr.msra.gmra.mxu1 %vm820_vm1, %v889_v19 }
 0x275   : > { %1352 = vmatprep.mubr.msk.f32.mxu1 %vm820_vm1, %v890_v34 }
 0x278   : > { %1353 = vmatmul.mubr.msk.f32.gmra.mxu1 %vm820_vm1, %v891_v20 }
 0x279   : > { %1355 = vmatprep.mubr.msk.f32.mxu1 %vm820_vm1, %v892_v21 }
 0x27c   : > { %1356 = vmatmul.mubr.msk.f32.gmra.mxu1 %vm820_vm1, %v893_v22 }
 0x27d   : > { %1358 = vmatprep.mubr.msk.f32.mxu1 %vm820_vm1, %v894_v23 }
 0x280   : > { %1359 = vmatmul.mubr.msk.f32.gmra.mxu1 %vm820_vm1, %v895_v24 }
 0x334   : > { %v1351_v25 = vpop.f32.mrf.mxu1 }
 0x335   : > { %1026 = vst.msk [vmem:[%s197_s29 + $0x8] sm:$0xff] %vm282_vm0, %v1351_v25 }
 0x336   : > { %v986_v27 = vpop.f32.mrf.mxu1 }
 0x337   : > { %1025 = vst.msk [vmem:[%s197_s29] sm:$0xff] %vm282_vm0, %v986_v27 }
 0x338   : > { %v1354_v29 = vpop.f32.mrf.mxu1 }
 0x339   : > { %1028 = vst.msk [vmem:[%s197_s29 + $0x18] sm:$0xff] %vm282_vm0, %v1354_v29 }
 0x33a   : > { %v996_v30 = vpop.f32.mrf.mxu1 }
 0x33b   : > { %1027 = vst.msk [vmem:[%s197_s29 + $0x10] sm:$0xff] %vm282_vm0, %v996_v30 }
 0x33c   : > { %v1357_v31 = vpop.f32.mrf.mxu1 }
 0x33d   : > { %1030 = vst.msk [vmem:[%s197_s29 + $0x28] sm:$0xff] %vm282_vm0, %v1357_v31 }
 0x33e   : > { %v1006_v32 = vpop.f32.mrf.mxu1 }
 0x33f   : > { %1029 = vst.msk [vmem:[%s197_s29 + $0x20] sm:$0xff] %vm282_vm0, %v1006_v32 }
 0x340   : > { %v1360_v33 = vpop.f32.mrf.mxu1 }
 0x341   : > { %1032 = vst.msk [vmem:[%s197_s29 + $0x38] sm:$0xff] %vm282_vm0, %v1360_v33 }
 0x342   : > { %v1016_v35 = vpop.f32.mrf.mxu1 }
 0x343   : > { %1031 = vst.msk [vmem:[%s197_s29 + $0x30] sm:$0xff] %vm282_vm0, %v1016_v35 }
 0x344 PF: > { %s14_s15 = sadd.s32 1, %s1394_s15  }
 0x345   : > { %p11_p4 = scmp.ge.s32.totalorder %s14_s15, 4  }
 0x347   :  { %13 = sbr.rel (!%p11_p4) target bundleno = 1 (0x1), region = 66 }

</bundles_post_ra>
